<compile_context>
chip_gen: v6e
topology: v6e:2x2x1
jax: 0.10.0
libtpu: 0.0.40
codegen_flags: <defaults>
</compile_context>

<pallas_src>
import functools

import jax
import jax.numpy as jnp
import numpy as np
from jax.experimental import pallas as pl
from jax.experimental.pallas import tpu as pltpu


def _convpool_kernel(lhs_ref, w_ref, b_ref, o_ref, mh_ref, *,
                     Nb, H, W, O_pad, Ho, Wo, pool_s):
    """One grid step = Nb images folded into the matmul M dimension.

    lhs_ref: (Nb*H*W, K_pad)      bf16 im2col patches (zero-padded K)
    w_ref:   (K_pad, O_pad)       bf16 weight matrix  (zero-padded K, O)
    b_ref:   (1, O_pad)           f32 conv bias (zero-padded)
    o_ref:   (Nb, Ho, Wo, O_pad)  f32 pooled output
    mh_ref:  (Nb*Ho, W, O_pad)    f32 scratch: H-pooled rows
    """
    # ---- single deep-K MXU matmul, f32 accumulation ----
    acc = jnp.dot(lhs_ref[...], w_ref[...],
                  preferred_element_type=jnp.float32)          # (Nb*H*W, O_pad)

    # ---- bias + ReLU fused in one VALU pass; back to (Nb, H, W, O_pad) ----
    conv = jnp.maximum(acc + b_ref[...], 0.0).reshape(Nb, H, W, O_pad)

    # ---- H-direction max (k=3) + stride-2 row decimation, outer axes only ----
    # rows 0,2,4,... and 1,3,5,... via an even/odd split of the (outer) H axis.
    rh = conv.reshape(Nb, H // 2, 2, W, O_pad)
    ev = rh[:, :, 0]                                            # (Nb, H//2, W, O_pad)
    od = rh[:, :, 1]
    mh = jnp.maximum(jnp.maximum(ev[:, :Ho], od[:, :Ho]), ev[:, 1:Ho + 1])
    mh_ref[...] = mh.reshape(Nb * Ho, W, O_pad)

    # ---- W-direction max (k=3) + stride-2 col decimation via strided reads ----
    p0 = mh_ref[:, pl.ds(0, Wo, pool_s), :]
    p1 = mh_ref[:, pl.ds(1, Wo, pool_s), :]
    p2 = mh_ref[:, pl.ds(2, Wo, pool_s), :]
    out = jnp.maximum(jnp.maximum(p0, p1), p2)                  # (Nb*Ho, Wo, O_pad)

    o_ref[...] = out.reshape(Nb, Ho, Wo, O_pad).astype(o_ref.dtype)


def _grid_steps_for_batch(N):
    """1 grid step on single-TC chips (v5e/v6e); 2 parallel steps on v7x."""
    try:
        kind = jax.devices()[0].device_kind.lower()
    except Exception:
        kind = ""
    if ("v7" in kind or "7x" in kind) and N >= 2 and N % 2 == 0:
        return 2
    return 1


def conv_pool_forward(x_nchw, w_oihw, bias):
    """ConvPool forward: conv2d 7x7/s1/p3 (+bias) -> ReLU -> maxpool 3x3/s2."""
    N, C, H, W = x_nchw.shape
    O, Cw, KH, KW = w_oihw.shape
    assert Cw == C
    PH, PW = (KH - 1) // 2, (KW - 1) // 2          # padding=3 for the 7x7 kernel
    pool_k, pool_s = 3, 2
    assert H % 2 == 0 and W % 2 == 0 and H >= pool_k and W >= pool_k, \
        "pooling decimation assumes even spatial dims >= pool kernel"
    Ho = (H - pool_k) // pool_s + 1
    Wo = (W - pool_k) // pool_s + 1

    K = C * KH * KW
    K_pad = ((K + 255) // 256) * 256               # full, unmasked MXU K tiles
    O_pad = ((O + 127) // 128) * 128               # lane-dense output channels

    # ---- wrapper-side glue (XLA): bf16 cast, padding, im2col, weight relayout ----
    x_nhwc = jnp.transpose(x_nchw, (0, 2, 3, 1)).astype(jnp.bfloat16)  # (N,H,W,C)
    # Patch feature columns are ordered (c, ky, kx) with c slowest (per
    # lax.conv_general_dilated_patches); the weight matrix below matches.
    patches = jax.lax.conv_general_dilated_patches(
        x_nhwc, filter_shape=(KH, KW), window_strides=(1, 1),
        padding=((PH, PH), (PW, PW)),
        dimension_numbers=("NHWC", "HWIO", "NHWC"))              # (N,H,W,C*KH*KW)
    lhs = jnp.pad(patches, ((0, 0), (0, 0), (0, 0), (0, K_pad - K)))
    lhs = lhs.reshape(N * H * W, K_pad)                          # (M, K_pad) bf16

    w_ckk_o = jnp.transpose(w_oihw, (1, 2, 3, 0)).reshape(K, O)  # rows = (c,ky,kx)
    w_mat = jnp.pad(w_ckk_o, ((0, K_pad - K), (0, O_pad - O))).astype(jnp.bfloat16)
    b_row = jnp.pad(bias.astype(jnp.float32).reshape(1, O),
                    ((0, 0), (0, O_pad - O)))                    # (1, O_pad) f32

    G = _grid_steps_for_batch(N)
    Nb = N // G

    kernel = functools.partial(
        _convpool_kernel, Nb=Nb, H=H, W=W, O_pad=O_pad, Ho=Ho, Wo=Wo, pool_s=pool_s)

    out_nhwc = pl.pallas_call(
        kernel,
        out_shape=jax.ShapeDtypeStruct((N, Ho, Wo, O_pad), jnp.float32),
        grid=(G,),
        in_specs=[
            pl.BlockSpec((Nb * H * W, K_pad), lambda g: (g, 0)),
            pl.BlockSpec((K_pad, O_pad), lambda g: (0, 0)),      # weights resident
            pl.BlockSpec((1, O_pad), lambda g: (0, 0)),
        ],
        out_specs=pl.BlockSpec((Nb, Ho, Wo, O_pad), lambda g: (g, 0, 0, 0)),
        scratch_shapes=[pltpu.VMEM((Nb * Ho, W, O_pad), jnp.float32)],
        compiler_params=pltpu.CompilerParams(
            dimension_semantics=("parallel",)),
    )(lhs, w_mat, b_row)

    # Drop channel padding, back to the PyTorch NCHW convention.
    return jnp.transpose(out_nhwc[..., :O], (0, 3, 1, 2))


def _reference(x_nchw, w_oihw, bias):
    # Mirror the kernel's numerics: conv operands rounded to bf16, f32 accumulate.
    xq = x_nchw.astype(jnp.bfloat16).astype(jnp.float32)
    wq = w_oihw.astype(jnp.bfloat16).astype(jnp.float32)
    y = jax.lax.conv_general_dilated(
        xq, wq, window_strides=(1, 1),
        padding=((3, 3), (3, 3)),
        dimension_numbers=("NCHW", "OIHW", "NCHW"),
        precision=jax.lax.Precision.HIGHEST)
    y = y + bias.reshape(1, -1, 1, 1)
    y = jnp.maximum(y, 0.0)
    y = jax.lax.reduce_window(
        y, -jnp.inf, jax.lax.max,
        window_dimensions=(1, 1, 3, 3),
        window_strides=(1, 1, 2, 2),
        padding="VALID")
    return y


if __name__ == "__main__":
    # Small shapes consistent with the module: batch=2, in=4, out=8, 16x16.
    N, C_IN, C_OUT, H, W = 2, 4, 8, 16, 16

    key = jax.random.PRNGKey(0)
    kx, kw, kb = jax.random.split(key, 3)
    x = jax.random.normal(kx, (N, C_IN, H, W), dtype=jnp.float32)
    # Deterministic synthetic parameters (Conv2d(in=4, out=8, k=7), bias=True).
    fan_in = C_IN * 7 * 7
    w = jax.random.normal(kw, (C_OUT, C_IN, 7, 7), dtype=jnp.float32) / np.sqrt(fan_in)
    b = jax.random.normal(kb, (C_OUT,), dtype=jnp.float32) * 0.1

    out = conv_pool_forward(x, w, b)
    out = jax.block_until_ready(out)

    ref = jax.block_until_ready(_reference(x, w, b))
    assert out.shape == (N, C_OUT, 7, 7), out.shape
    np.testing.assert_allclose(np.asarray(out), np.asarray(ref),
                               rtol=1e-3, atol=1e-3)
    print("KERNEL_OK")
</pallas_src>

<mosaic_0001>
module attributes {stable_mosaic.version = 11 : i64} {
  func.func @_convpool_kernel(%arg0: i32, %arg1: memref<512x256xbf16, #tpu.memory_space<vmem>>, %arg2: memref<256x128xbf16, #tpu.memory_space<vmem>>, %arg3: memref<1x128xf32, #tpu.memory_space<vmem>>, %arg4: memref<2x7x7x128xf32, #tpu.memory_space<vmem>>, %arg5: memref<14x16x128xf32, #tpu.memory_space<vmem>>) attributes {dimension_semantics = [#tpu.dimension_semantics<parallel>], iteration_bounds = array<i64: 1>, scalar_prefetch = 0 : i64, scratch_operands = 1 : i64, tpu.core_type = #tpu.core_type<tc>, window_params = [{transform_indices = @transform_0, window_bounds = array<i64: 512, 256>}, {pipeline_mode = #tpu.pipeline_mode<synchronous>, transform_indices = @transform_1, window_bounds = array<i64: 256, 128>}, {pipeline_mode = #tpu.pipeline_mode<synchronous>, transform_indices = @transform_2, window_bounds = array<i64: 1, 128>}, {transform_indices = @transform_3, window_bounds = array<i64: 2, 7, 7, 128>}]} {
    %c0 = arith.constant 0 : index
    %c0_0 = arith.constant 0 : index
    %0 = vector.load %arg1[%c0, %c0_0] : memref<512x256xbf16, #tpu.memory_space<vmem>>, vector<512x256xbf16>
    %c0_1 = arith.constant 0 : index
    %c0_2 = arith.constant 0 : index
    %1 = vector.load %arg2[%c0_1, %c0_2] : memref<256x128xbf16, #tpu.memory_space<vmem>>, vector<256x128xbf16>
    %cst = arith.constant dense<0.000000e+00> : vector<512x128xf32>
    %2 = tpu.matmul %0, %1, %cst {dimension_numbers = #tpu.dot_dimension_numbers<[1], [0], [0], [1], [0, 0, 1, 1], [], []>} : vector<512x256xbf16>, vector<256x128xbf16>, vector<512x128xf32> -> vector<512x128xf32>
    %c0_3 = arith.constant 0 : index
    %c0_4 = arith.constant 0 : index
    %3 = vector.load %arg3[%c0_3, %c0_4] : memref<1x128xf32, #tpu.memory_space<vmem>>, vector<1x128xf32>
    %4 = vector.broadcast %3 : vector<1x128xf32> to vector<512x128xf32>
    %5 = arith.addf %2, %4 : vector<512x128xf32>
    %cst_5 = arith.constant 0.000000e+00 : f32
    %6 = vector.broadcast %cst_5 : f32 to vector<512x128xf32>
    %7 = arith.maximumf %5, %6 : vector<512x128xf32>
    %8 = vector.shape_cast %7 : vector<512x128xf32> to vector<2x16x16x128xf32>
    %9 = vector.shape_cast %8 : vector<2x16x16x128xf32> to vector<2x8x2x16x128xf32>
    %10 = vector.extract_strided_slice %9 {offsets = [0, 0, 0, 0, 0], sizes = [2, 8, 1, 16, 128], strides = [1, 1, 1, 1, 1]} : vector<2x8x2x16x128xf32> to vector<2x8x1x16x128xf32>
    %11 = vector.shape_cast %10 : vector<2x8x1x16x128xf32> to vector<2x8x16x128xf32>
    %12 = vector.extract_strided_slice %9 {offsets = [0, 0, 1, 0, 0], sizes = [2, 8, 1, 16, 128], strides = [1, 1, 1, 1, 1]} : vector<2x8x2x16x128xf32> to vector<2x8x1x16x128xf32>
    %13 = vector.shape_cast %12 : vector<2x8x1x16x128xf32> to vector<2x8x16x128xf32>
    %14 = vector.extract_strided_slice %11 {offsets = [0, 0, 0, 0], sizes = [2, 7, 16, 128], strides = [1, 1, 1, 1]} : vector<2x8x16x128xf32> to vector<2x7x16x128xf32>
    %15 = vector.extract_strided_slice %13 {offsets = [0, 0, 0, 0], sizes = [2, 7, 16, 128], strides = [1, 1, 1, 1]} : vector<2x8x16x128xf32> to vector<2x7x16x128xf32>
    %16 = arith.maximumf %14, %15 : vector<2x7x16x128xf32>
    %17 = vector.extract_strided_slice %11 {offsets = [0, 1, 0, 0], sizes = [2, 7, 16, 128], strides = [1, 1, 1, 1]} : vector<2x8x16x128xf32> to vector<2x7x16x128xf32>
    %18 = arith.maximumf %16, %17 : vector<2x7x16x128xf32>
    %19 = vector.shape_cast %18 : vector<2x7x16x128xf32> to vector<14x16x128xf32>
    %c0_6 = arith.constant 0 : index
    %c0_7 = arith.constant 0 : index
    %c0_8 = arith.constant 0 : index
    %20 = vector.load %arg5[%c0_6, %c0_7, %c0_8] : memref<14x16x128xf32, #tpu.memory_space<vmem>>, vector<14x16x128xf32>
    tpu.vector_store %arg5[%c0_6, %c0_7, %c0_8], %19 {strides = array<i32>} : memref<14x16x128xf32, #tpu.memory_space<vmem>>, vector<14x16x128xf32>,
    %c0_9 = arith.constant 0 : index
    %c0_10 = arith.constant 0 : index
    %c0_11 = arith.constant 0 : index
    %21 = tpu.strided_load %arg5[%c0_9, %c0_10, %c0_11] {strides = array<i32: 1, 2, 1>} : memref<14x16x128xf32, #tpu.memory_space<vmem>>, vector<14x7x128xf32>
    %c0_12 = arith.constant 0 : index
    %c1 = arith.constant 1 : index
    %c0_13 = arith.constant 0 : index
    %22 = tpu.strided_load %arg5[%c0_12, %c1, %c0_13] {strides = array<i32: 1, 2, 1>} : memref<14x16x128xf32, #tpu.memory_space<vmem>>, vector<14x7x128xf32>
    %c0_14 = arith.constant 0 : index
    %c2 = arith.constant 2 : index
    %c0_15 = arith.constant 0 : index
    %23 = tpu.strided_load %arg5[%c0_14, %c2, %c0_15] {strides = array<i32: 1, 2, 1>} : memref<14x16x128xf32, #tpu.memory_space<vmem>>, vector<14x7x128xf32>
    %24 = arith.maximumf %21, %22 : vector<14x7x128xf32>
    %25 = arith.maximumf %24, %23 : vector<14x7x128xf32>
    %26 = vector.shape_cast %25 : vector<14x7x128xf32> to vector<2x7x7x128xf32>
    %c0_16 = arith.constant 0 : index
    %c0_17 = arith.constant 0 : index
    %c0_18 = arith.constant 0 : index
    %c0_19 = arith.constant 0 : index
    %27 = vector.load %arg4[%c0_16, %c0_17, %c0_18, %c0_19] : memref<2x7x7x128xf32, #tpu.memory_space<vmem>>, vector<2x7x7x128xf32>
    tpu.vector_store %arg4[%c0_16, %c0_17, %c0_18, %c0_19], %26 {strides = array<i32>} : memref<2x7x7x128xf32, #tpu.memory_space<vmem>>, vector<2x7x7x128xf32>,
    return
  }
  func.func @transform_0(%arg0: i32) -> (i32, i32) {
    %c0_i32 = arith.constant 0 : i32
    %c0_i32_0 = arith.constant 0 : i32
    return %arg0, %c0_i32 : i32, i32
  }
  func.func @transform_1(%arg0: i32) -> (i32, i32) {
    %c0_i32 = arith.constant 0 : i32
    %c0_i32_0 = arith.constant 0 : i32
    %c0_i32_1 = arith.constant 0 : i32
    return %c0_i32, %c0_i32_0 : i32, i32
  }
  func.func @transform_2(%arg0: i32) -> (i32, i32) {
    %c0_i32 = arith.constant 0 : i32
    %c0_i32_0 = arith.constant 0 : i32
    %c0_i32_1 = arith.constant 0 : i32
    return %c0_i32, %c0_i32_0 : i32, i32
  }
  func.func @transform_3(%arg0: i32) -> (i32, i32, i32, i32) {
    %c0_i32 = arith.constant 0 : i32
    %c0_i32_0 = arith.constant 0 : i32
    %c0_i32_1 = arith.constant 0 : i32
    %c0_i32_2 = arith.constant 0 : i32
    return %arg0, %c0_i32, %c0_i32_0, %c0_i32_1 : i32, i32, i32, i32
  }
}

</mosaic_0001>

<bundles_post_ra>
// kernel: tpu_custom_call.1
= control target key start
LH: loop header
LB: loop body
LE: loop exit
PB: predicated region body
PF: predicated region fallthrough
CT: control target
= control target key end

     0   :  { %8 = vsyncpa [#allocation4], 0  ;;  %s1612_s0 = inlined_call_operand.hbm [shape: bf16[512,256], index: 0, kind: input, shape index: {}]   ;;  %s1613_s1 = inlined_call_operand.hbm [shape: bf16[256,128], index: 1, kind: input, shape index: {}]   ;;  %s1614_s2 = inlined_call_operand.vmem [shape: f32[1,128], index: 2, kind: input, shape index: {}]   ;;  %s1615_s3 = inlined_call_operand.vmem [shape: f32[2,7,7,128], index: 3, kind: output, shape index: {}]  }
   0x1   :  { %9 = vsyncpa [#allocation6], 0  ;;  %s1398_s12 = smov [#allocation3]  }
   0x2   :  { %s15_s13 = sshll.u32 %s1398_s12, 4  ;;  %s16_s13 = int_to_ptr.vmem [resolvable:$true] %s15_s13 }
   0x3   :  { %s1362_s14 = scalar_lea.vmem %s16_s13, 8192  ;;  %p1367_p1 = scmp.lt.s32.totalorder %s16_s13, %s16_s13 }
   0x4   :  { %p1363_p0 = scmp.ne.s32.totalorder %s16_s13, %s1362_s14  ;;  %p1368_p2 = scmp.lt.s32.totalorder %s1362_s14, %s1362_s14 }
   0x6   :  { %p1369_p3 = por %p1368_p2, %p1367_p1 }
   0x8   :  { %p1370_p4 = pnand %p1369_p3, %p1363_p0 }
   0xa   :  { %1373 = shalt.err (!%p1370_p4)
}
   0xb   :  { %s1399_s15 = smov 128   ;;  %s1400_s16 = smov 8  }
   0xc   :  { %21 = dma.hbm_to_vmem [thread:$0]  %s1612_s0, 8192, %s16_s13, [#allocation4], %s1399_s15, %s1399_s15, %s1400_s16  }
   0xd   :  { %s1401_s19 = smov [#allocation5]  }
   0xe   :  { %s27_s20 = sshll.u32 %s1401_s19, 4  ;;  %s28_s20 = int_to_ptr.vmem [resolvable:$true] %s27_s20 }
   0xf   :  { %s1382_s21 = scalar_lea.vmem %s28_s20, 2048  ;;  %p1387_p6 = scmp.lt.s32.totalorder %s28_s20, %s28_s20 }
  0x10   :  { %p1383_p5 = scmp.ne.s32.totalorder %s28_s20, %s1382_s21  ;;  %p1388_p7 = scmp.lt.s32.totalorder %s1382_s21, %s1382_s21 }
  0x12   :  { %p1389_p8 = por %p1388_p7, %p1387_p6 }
  0x14   :  { %p1390_p9 = pnand %p1389_p8, %p1383_p5 }
  0x16   :  { %1393 = shalt.err (!%p1390_p9)
}
  0x17   :  { %s1402_s22 = smov 64   ;;  %s1403_s23 = smov 4  }
  0x18   :  { %33 = dma.hbm_to_vmem [thread:$0]  %s1613_s1, 2048, %s28_s20, [#allocation6], %s1402_s22, %s1402_s22, %s1403_s23  }
  0x19   :  { %1394 = dma.done.wait [#allocation4], 8192  }
  0x1a   :  { %1395 = vsyncadd [#allocation4], 4294959104 }
  0x1b   :  { %1396 = dma.done.wait [#allocation6], 2048  }
  0x1c   :  { %1397 = vsyncadd [#allocation6], 4294965248  ;;  %v1404_v0 = vmov 0   ;;  %v1242_v1 = vld [vmem:[#allocation5 + $0x38] sm:$0xff]   ;;  %v1243_v2 = vld [vmem:[#allocation5 + $0x30] sm:$0xff]  }
  0x1d   :  { %562 = vmatprep.subr.bf16.mxu0 %v1404_v0  ;;  %1203 = vmatprep.subr.bf16.mxu1 %v1404_v0  ;;  %v1244_v3 = vld [vmem:[#allocation5 + $0x28] sm:$0xff]   ;;  %v1245_v4 = vld [vmem:[#allocation5 + $0x20] sm:$0xff]   ;;  %v1246_v5 = vld [vmem:[#allocation5 + $0x18] sm:$0xff]  }
  0x1e   :  { %563 = vmatpush1.bf16.msra.mxu0 %v1242_v1  ;;  %1219 = vmatpush1.bf16.msra.mxu1 %v1242_v1  ;;  %v1260_v6 = vld [vmem:[#allocation3 + $0x4] ss:$8 sps:$4 sm:$0xff]   ;;  %v1247_v7 = vld [vmem:[#allocation5 + $0x10] sm:$0xff]   ;;  %v1250_v11 = vld [vmem:[#allocation5 + $0x78] sm:$0xff]  }
  0x1f   :  { %564 = vmatprep.subr.bf16.mxu0 %v1404_v0  ;;  %1204 = vmatprep.subr.bf16.mxu1 %v1404_v0  ;;  %v1263_v8 = vld [vmem:[#allocation3 + $0x104] ss:$8 sps:$4 sm:$0xff]   ;;  %v1251_v12 = vld [vmem:[#allocation5 + $0x70] sm:$0xff]   ;;  %v1254_v15 = vld [vmem:[#allocation5 + $0x58] sm:$0xff]  }
  0x20   :  { %594 = vmatprep.mubr.bf16.mxu0 %v1260_v6  ;;  %720 = vmatprep.mubr.bf16.mxu1 %v1263_v8  ;;  %v1248_v9 = vld [vmem:[#allocation5 + $0x8] sm:$0xff]   ;;  %v1249_v10 = vld [vmem:[#allocation5] sm:$0xff]   ;;  %v1255_v16 = vld [vmem:[#allocation5 + $0x50] sm:$0xff]  }
  0x21   :  { %v1252_v13 = vld [vmem:[#allocation5 + $0x68] sm:$0xff]   ;;  %v1253_v14 = vld [vmem:[#allocation5 + $0x60] sm:$0xff]   ;;  %v1264_v21 = vld [vmem:[#allocation3 + $0x14] ss:$8 sps:$4 sm:$0xff]  }
  0x22   :  { %565 = vmatpush1.bf16.msra.mxu0 %v1243_v2  ;;  %1220 = vmatpush1.bf16.msra.mxu1 %v1243_v2  ;;  %v1256_v17 = vld [vmem:[#allocation5 + $0x48] sm:$0xff]   ;;  %v1257_v18 = vld [vmem:[#allocation5 + $0x40] sm:$0xff]   ;;  %v1266_v22 = vld [vmem:[#allocation3 + $0x114] ss:$8 sps:$4 sm:$0xff]  }
  0x23   :  { %566 = vmatprep.subr.bf16.mxu0 %v1404_v0  ;;  %1205 = vmatprep.subr.bf16.mxu1 %v1404_v0  ;;  %v1258_v19 = vld [vmem:[#allocation3] ss:$8 sps:$4 sm:$0xff]   ;;  %v1268_v23 = vld [vmem:[#allocation3 + $0x10] ss:$8 sps:$4 sm:$0xff]   ;;  %v1270_v25 = vld [vmem:[#allocation3 + $0x24] ss:$8 sps:$4 sm:$0xff]  }
  0x24   :  { %v1261_v20 = vld [vmem:[#allocation3 + $0x100] ss:$8 sps:$4 sm:$0xff]   ;;  %v1269_v24 = vld [vmem:[#allocation3 + $0x110] ss:$8 sps:$4 sm:$0xff]   ;;  %v1272_v26 = vld [vmem:[#allocation3 + $0x124] ss:$8 sps:$4 sm:$0xff]  }
  0x25   :  { %v1274_v27 = vld [vmem:[#allocation3 + $0x20] ss:$8 sps:$4 sm:$0xff]   ;;  %v1276_v29 = vld [vmem:[#allocation3 + $0x34] ss:$8 sps:$4 sm:$0xff]   ;;  %v1280_v31 = vld [vmem:[#allocation3 + $0x30] ss:$8 sps:$4 sm:$0xff]  }
  0x26   :  { %567 = vmatpush1.bf16.msra.mxu0 %v1244_v3  ;;  %1221 = vmatpush1.bf16.msra.mxu1 %v1244_v3  ;;  %v1275_v28 = vld [vmem:[#allocation3 + $0x120] ss:$8 sps:$4 sm:$0xff]   ;;  %v1278_v30 = vld [vmem:[#allocation3 + $0x134] ss:$8 sps:$4 sm:$0xff]   ;;  %v1281_v32 = vld [vmem:[#allocation3 + $0x130] ss:$8 sps:$4 sm:$0xff]  }
  0x27   :  { %568 = vmatprep.subr.bf16.mxu0 %v1404_v0  ;;  %1206 = vmatprep.subr.bf16.mxu1 %v1404_v0  ;;  %v1282_v33 = vld [vmem:[#allocation3 + $0x44] ss:$8 sps:$4 sm:$0xff]   ;;  %v1286_v35 = vld [vmem:[#allocation3 + $0x40] ss:$8 sps:$4 sm:$0xff]   ;;  %v1288_v37 = vld [vmem:[#allocation3 + $0x54] ss:$8 sps:$4 sm:$0xff]  }
  0x28   :  { %v1284_v34 = vld [vmem:[#allocation3 + $0x144] ss:$8 sps:$4 sm:$0xff]   ;;  %v1287_v36 = vld [vmem:[#allocation3 + $0x140] ss:$8 sps:$4 sm:$0xff]   ;;  %v1290_v38 = vld [vmem:[#allocation3 + $0x154] ss:$8 sps:$4 sm:$0xff]  }
  0x29   :  { %v1292_v39 = vld [vmem:[#allocation3 + $0x50] ss:$8 sps:$4 sm:$0xff]   ;;  %v1294_v41 = vld [vmem:[#allocation3 + $0x64] ss:$8 sps:$4 sm:$0xff]   ;;  %v1298_v43 = vld [vmem:[#allocation3 + $0x60] ss:$8 sps:$4 sm:$0xff]  }
  0x2a   :  { %569 = vmatpush1.bf16.msra.mxu0 %v1245_v4  ;;  %1222 = vmatpush1.bf16.msra.mxu1 %v1245_v4  ;;  %v1293_v40 = vld [vmem:[#allocation3 + $0x150] ss:$8 sps:$4 sm:$0xff]   ;;  %v1296_v42 = vld [vmem:[#allocation3 + $0x164] ss:$8 sps:$4 sm:$0xff]   ;;  %v1299_v44 = vld [vmem:[#allocation3 + $0x160] ss:$8 sps:$4 sm:$0xff]  }
  0x2b   :  { %570 = vmatprep.subr.bf16.mxu0 %v1404_v0  ;;  %1207 = vmatprep.subr.bf16.mxu1 %v1404_v0  ;;  %v1300_v45 = vld [vmem:[#allocation3 + $0x74] ss:$8 sps:$4 sm:$0xff]   ;;  %v1304_v47 = vld [vmem:[#allocation3 + $0x70] ss:$8 sps:$4 sm:$0xff]   ;;  %v1306_v49 = vld [vmem:[#allocation3 + $0x84] ss:$8 sps:$4 sm:$0xff]  }
  0x2c   :  { %v1302_v46 = vld [vmem:[#allocation3 + $0x174] ss:$8 sps:$4 sm:$0xff]   ;;  %v1305_v48 = vld [vmem:[#allocation3 + $0x170] ss:$8 sps:$4 sm:$0xff]   ;;  %v1308_v50 = vld [vmem:[#allocation3 + $0x184] ss:$8 sps:$4 sm:$0xff]  }
  0x2d   :  { %v1310_v51 = vld [vmem:[#allocation3 + $0x80] ss:$8 sps:$4 sm:$0xff]   ;;  %v1312_v53 = vld [vmem:[#allocation3 + $0x94] ss:$8 sps:$4 sm:$0xff]   ;;  %v1316_v55 = vld [vmem:[#allocation3 + $0x90] ss:$8 sps:$4 sm:$0xff]  }
  0x2e   :  { %571 = vmatpush1.bf16.msra.mxu0 %v1246_v5  ;;  %1223 = vmatpush1.bf16.msra.mxu1 %v1246_v5  ;;  %v1311_v52 = vld [vmem:[#allocation3 + $0x180] ss:$8 sps:$4 sm:$0xff]   ;;  %v1314_v54 = vld [vmem:[#allocation3 + $0x194] ss:$8 sps:$4 sm:$0xff]   ;;  %v1317_v56 = vld [vmem:[#allocation3 + $0x190] ss:$8 sps:$4 sm:$0xff]  }
  0x2f   :  { %572 = vmatprep.subr.bf16.mxu0 %v1404_v0  ;;  %1208 = vmatprep.subr.bf16.mxu1 %v1404_v0  ;;  %v1318_v57 = vld [vmem:[#allocation3 + $0xa4] ss:$8 sps:$4 sm:$0xff]   ;;  %v1322_v59 = vld [vmem:[#allocation3 + $0xa0] ss:$8 sps:$4 sm:$0xff]   ;;  %v1324_v61 = vld [vmem:[#allocation3 + $0xb4] ss:$8 sps:$4 sm:$0xff]  }
  0x30   :  { %v1320_v58 = vld [vmem:[#allocation3 + $0x1a4] ss:$8 sps:$4 sm:$0xff]   ;;  %v1323_v60 = vld [vmem:[#allocation3 + $0x1a0] ss:$8 sps:$4 sm:$0xff]   ;;  %v1326_v62 = vld [vmem:[#allocation3 + $0x1b4] ss:$8 sps:$4 sm:$0xff]  }
  0x31   :  { %v1328_v63 = vld [vmem:[#allocation3 + $0xb0] ss:$8 sps:$4 sm:$0xff]   ;;  %v1330_v1 = vld [vmem:[#allocation3 + $0xc4] ss:$8 sps:$4 sm:$0xff]   ;;  %v1334_v3 = vld [vmem:[#allocation3 + $0xc0] ss:$8 sps:$4 sm:$0xff]  }
  0x32   :  { %573 = vmatpush1.bf16.msra.mxu0 %v1247_v7  ;;  %1224 = vmatpush1.bf16.msra.mxu1 %v1247_v7  ;;  %v1332_v2 = vld [vmem:[#allocation3 + $0x1c4] ss:$8 sps:$4 sm:$0xff]   ;;  %v1335_v4 = vld [vmem:[#allocation3 + $0x1c0] ss:$8 sps:$4 sm:$0xff]   ;;  %v1336_v5 = vld [vmem:[#allocation3 + $0xd4] ss:$8 sps:$4 sm:$0xff]  }
  0x33   :  { %574 = vmatprep.subr.bf16.mxu0 %v1404_v0  ;;  %1209 = vmatprep.subr.bf16.mxu1 %v1404_v0  ;;  %v1338_v6 = vld [vmem:[#allocation3 + $0x1d4] ss:$8 sps:$4 sm:$0xff]   ;;  %v1340_v7 = vld [vmem:[#allocation3 + $0xd0] ss:$8 sps:$4 sm:$0xff]  }
  0x34   :  { %v1341_v8 = vld [vmem:[#allocation3 + $0x1d0] ss:$8 sps:$4 sm:$0xff]  }
  0x36   :  { %575 = vmatpush1.bf16.msra.mxu0 %v1248_v9  ;;  %1225 = vmatpush1.bf16.msra.mxu1 %v1248_v9  ;;  %v1342_v9 = vld [vmem:[#allocation3 + $0xe4] ss:$8 sps:$4 sm:$0xff]  }
  0x37   :  { %576 = vmatprep.subr.bf16.mxu0 %v1404_v0  ;;  %1210 = vmatprep.subr.bf16.mxu1 %v1404_v0 }
  0x3a   :  { %577 = vmatpush1.bf16.msra.mxu0 %v1249_v10  ;;  %1226 = vmatpush1.bf16.msra.mxu1 %v1249_v10  ;;  %v1344_v10 = vld [vmem:[#allocation3 + $0x1e4] ss:$8 sps:$4 sm:$0xff]  }
  0x3b   :  { %578 = vmatprep.subr.bf16.mxu0 %v1404_v0  ;;  %1211 = vmatprep.subr.bf16.mxu1 %v1404_v0 }
  0x3e   :  { %579 = vmatpush2.bf16.msra.mxu0 %v1250_v11  ;;  %1227 = vmatpush2.bf16.msra.mxu1 %v1250_v11  ;;  %v1346_v11 = vld [vmem:[#allocation3 + $0xe0] ss:$8 sps:$4 sm:$0xff]  }
  0x3f   :  { %580 = vmatprep.subr.bf16.mxu0 %v1404_v0  ;;  %1212 = vmatprep.subr.bf16.mxu1 %v1404_v0 }
  0x42   :  { %581 = vmatpush2.bf16.msra.mxu0 %v1251_v12  ;;  %1228 = vmatpush2.bf16.msra.mxu1 %v1251_v12  ;;  %v1347_v12 = vld [vmem:[#allocation3 + $0x1e0] ss:$8 sps:$4 sm:$0xff]  }
  0x43   :  { %582 = vmatprep.subr.bf16.mxu0 %v1404_v0  ;;  %1213 = vmatprep.subr.bf16.mxu1 %v1404_v0 }
  0x46   :  { %583 = vmatpush2.bf16.msra.mxu0 %v1252_v13  ;;  %1229 = vmatpush2.bf16.msra.mxu1 %v1252_v13  ;;  %v1348_v13 = vld [vmem:[#allocation3 + $0xf4] ss:$8 sps:$4 sm:$0xff]  }
  0x47   :  { %584 = vmatprep.subr.bf16.mxu0 %v1404_v0  ;;  %1214 = vmatprep.subr.bf16.mxu1 %v1404_v0 }
  0x4a   :  { %585 = vmatpush2.bf16.msra.mxu0 %v1253_v14  ;;  %1230 = vmatpush2.bf16.msra.mxu1 %v1253_v14  ;;  %v1350_v14 = vld [vmem:[#allocation3 + $0x1f4] ss:$8 sps:$4 sm:$0xff]  }
  0x4b   :  { %586 = vmatprep.subr.bf16.mxu0 %v1404_v0  ;;  %1215 = vmatprep.subr.bf16.mxu1 %v1404_v0 }
  0x4e   :  { %587 = vmatpush2.bf16.msra.mxu0 %v1254_v15  ;;  %1231 = vmatpush2.bf16.msra.mxu1 %v1254_v15  ;;  %v1352_v15 = vld [vmem:[#allocation3 + $0xf0] ss:$8 sps:$4 sm:$0xff]  }
  0x4f   :  { %588 = vmatprep.subr.bf16.mxu0 %v1404_v0  ;;  %1216 = vmatprep.subr.bf16.mxu1 %v1404_v0 }
  0x52   :  { %589 = vmatpush2.bf16.msra.mxu0 %v1255_v16  ;;  %1232 = vmatpush2.bf16.msra.mxu1 %v1255_v16  ;;  %v1353_v16 = vld [vmem:[#allocation3 + $0x1f0] ss:$8 sps:$4 sm:$0xff]  }
  0x53   :  { %590 = vmatprep.subr.bf16.mxu0 %v1404_v0  ;;  %1217 = vmatprep.subr.bf16.mxu1 %v1404_v0 }
  0x56   :  { %591 = vmatpush2.bf16.msra.mxu0 %v1256_v17  ;;  %1233 = vmatpush2.bf16.msra.mxu1 %v1256_v17 }
  0x57   :  { %592 = vmatprep.subr.bf16.mxu0 %v1404_v0  ;;  %1218 = vmatprep.subr.bf16.mxu1 %v1404_v0  ;;  %v1329_v0 = vld [vmem:[#allocation3 + $0x1b0] ss:$8 sps:$4 sm:$0xff]  }
  0x5a   :  { %593 = vmatpush2.bf16.msra.mxu0 %v1257_v18  ;;  %1234 = vmatpush2.bf16.msra.mxu1 %v1257_v18 }
  0x5d   :  { %595 = vmatmul.mubr.bf16.vlgmr.msra.gmra.mxu0 %v1258_v19  ;;  %721 = vmatmul.mubr.bf16.vlgmr.msra.gmra.mxu1 %v1261_v20 }
  0x5e   :  { %602 = vmatprep.mubr.bf16.mxu0 %v1264_v21  ;;  %728 = vmatprep.mubr.bf16.mxu1 %v1266_v22 }
  0x65   :  { %603 = vmatmul.mubr.bf16.gmra.mxu0 %v1268_v23  ;;  %729 = vmatmul.mubr.bf16.gmra.mxu1 %v1269_v24 }
  0x66   :  { %610 = vmatprep.mubr.bf16.mxu0 %v1270_v25  ;;  %736 = vmatprep.mubr.bf16.mxu1 %v1272_v26 }
  0x6d   :  { %611 = vmatmul.mubr.bf16.gmra.mxu0 %v1274_v27  ;;  %737 = vmatmul.mubr.bf16.gmra.mxu1 %v1275_v28  ;;  %v1466_v27 = vld [vmem:[%s1614_s2] ss:$0 sm:$0xff] }
  0x6e   :  { %618 = vmatprep.mubr.bf16.mxu0 %v1276_v29  ;;  %744 = vmatprep.mubr.bf16.mxu1 %v1278_v30 }
  0x75   :  { %619 = vmatmul.mubr.bf16.gmra.mxu0 %v1280_v31  ;;  %745 = vmatmul.mubr.bf16.gmra.mxu1 %v1281_v32 }
  0x76   :  { %626 = vmatprep.mubr.bf16.mxu0 %v1282_v33  ;;  %752 = vmatprep.mubr.bf16.mxu1 %v1284_v34 }
  0x7d   :  { %627 = vmatmul.mubr.bf16.gmra.mxu0 %v1286_v35  ;;  %753 = vmatmul.mubr.bf16.gmra.mxu1 %v1287_v36 }
  0x7e   :  { %634 = vmatprep.mubr.bf16.mxu0 %v1288_v37  ;;  %760 = vmatprep.mubr.bf16.mxu1 %v1290_v38 }
  0x85   :  { %635 = vmatmul.mubr.bf16.gmra.mxu0 %v1292_v39  ;;  %761 = vmatmul.mubr.bf16.gmra.mxu1 %v1293_v40 }
  0x86   :  { %642 = vmatprep.mubr.bf16.mxu0 %v1294_v41  ;;  %768 = vmatprep.mubr.bf16.mxu1 %v1296_v42 }
  0x8d   :  { %643 = vmatmul.mubr.bf16.gmra.mxu0 %v1298_v43  ;;  %769 = vmatmul.mubr.bf16.gmra.mxu1 %v1299_v44 }
  0x8e   :  { %650 = vmatprep.mubr.bf16.mxu0 %v1300_v45  ;;  %776 = vmatprep.mubr.bf16.mxu1 %v1302_v46 }
  0x95   :  { %651 = vmatmul.mubr.bf16.gmra.mxu0 %v1304_v47  ;;  %777 = vmatmul.mubr.bf16.gmra.mxu1 %v1305_v48 }
  0x96   :  { %658 = vmatprep.mubr.bf16.mxu0 %v1306_v49  ;;  %784 = vmatprep.mubr.bf16.mxu1 %v1308_v50 }
  0x9d   :  { %659 = vmatmul.mubr.bf16.gmra.mxu0 %v1310_v51  ;;  %785 = vmatmul.mubr.bf16.gmra.mxu1 %v1311_v52 }
  0x9e   :  { %666 = vmatprep.mubr.bf16.mxu0 %v1312_v53  ;;  %792 = vmatprep.mubr.bf16.mxu1 %v1314_v54 }
  0xa5   :  { %667 = vmatmul.mubr.bf16.gmra.mxu0 %v1316_v55  ;;  %793 = vmatmul.mubr.bf16.gmra.mxu1 %v1317_v56 }
  0xa6   :  { %674 = vmatprep.mubr.bf16.mxu0 %v1318_v57  ;;  %800 = vmatprep.mubr.bf16.mxu1 %v1320_v58 }
  0xad   :  { %675 = vmatmul.mubr.bf16.gmra.mxu0 %v1322_v59  ;;  %801 = vmatmul.mubr.bf16.gmra.mxu1 %v1323_v60 }
  0xae   :  { %682 = vmatprep.mubr.bf16.mxu0 %v1324_v61  ;;  %808 = vmatprep.mubr.bf16.mxu1 %v1326_v62 }
  0xb5   :  { %683 = vmatmul.mubr.bf16.gmra.mxu0 %v1328_v63  ;;  %809 = vmatmul.mubr.bf16.gmra.mxu1 %v1329_v0 }
  0xb6   :  { %690 = vmatprep.mubr.bf16.mxu0 %v1330_v1  ;;  %816 = vmatprep.mubr.bf16.mxu1 %v1332_v2 }
  0xbd   :  { %691 = vmatmul.mubr.bf16.gmra.mxu0 %v1334_v3  ;;  %817 = vmatmul.mubr.bf16.gmra.mxu1 %v1335_v4 }
  0xbe   :  { %698 = vmatprep.mubr.bf16.mxu0 %v1336_v5  ;;  %824 = vmatprep.mubr.bf16.mxu1 %v1338_v6 }
  0xc5   :  { %699 = vmatmul.mubr.bf16.gmra.mxu0 %v1340_v7  ;;  %825 = vmatmul.mubr.bf16.gmra.mxu1 %v1341_v8 }
  0xc6   :  { %706 = vmatprep.mubr.bf16.mxu0 %v1342_v9  ;;  %832 = vmatprep.mubr.bf16.mxu1 %v1344_v10 }
  0xcd   :  { %707 = vmatmul.mubr.bf16.gmra.mxu0 %v1346_v11  ;;  %833 = vmatmul.mubr.bf16.gmra.mxu1 %v1347_v12 }
  0xce   :  { %714 = vmatprep.mubr.bf16.mxu0 %v1348_v13  ;;  %840 = vmatprep.mubr.bf16.mxu1 %v1350_v14 }
  0xd5   :  { %715 = vmatmul.mubr.bf16.gmra.mxu0 %v1352_v15  ;;  %841 = vmatmul.mubr.bf16.gmra.mxu1 %v1353_v16 }
 0x11d   :  { %v596_v17 = vpop.f32.mrf.mxu0  ;;  %v722_v18 = vpop.f32.mrf.mxu1 }
 0x11e   :  { %v597_v32 = vadd.f32 %v1466_v27, %v596_v17  ;;  %v723_v33 = vadd.f32 %v1466_v27, %v722_v18 }
 0x11f   :  { %v598_v19 = vpop.f32.mrf.mxu0  ;;  %v724_v20 = vpop.f32.mrf.mxu1 }
 0x120   :  { %v847_v42 = vmax.f32 %v597_v32, 0.0  ;;  %v877_v43 = vmax.f32 %v723_v33, 0.0 }
 0x121   :  { %v599_v21 = vpop.f32.mrf.mxu0  ;;  %v725_v22 = vpop.f32.mrf.mxu1 }
 0x122   :  { %v600_v44 = vadd.f32 %v1466_v27, %v599_v21  ;;  %v726_v45 = vadd.f32 %v1466_v27, %v725_v22 }
 0x123   :  { %v601_v23 = vpop.f32.mrf.mxu0  ;;  %v727_v24 = vpop.f32.mrf.mxu1 }
 0x124   :  { %v848_v58 = vmax.f32 %v600_v44, 0.0  ;;  %v878_v59 = vmax.f32 %v726_v45, 0.0 }
 0x125   :  { %v604_v25 = vpop.f32.mrf.mxu0  ;;  %v730_v26 = vpop.f32.mrf.mxu1 }
 0x126   :  { %v605_v28 = vadd.f32 %v1466_v27, %v604_v25  ;;  %v731_v29 = vadd.f32 %v1466_v27, %v730_v26 }
 0x127   :  { %v606_v30 = vpop.f32.mrf.mxu0  ;;  %v732_v31 = vpop.f32.mrf.mxu1 }
 0x128   :  { %v849_v36 = vmax.f32 %v605_v28, 0.0  ;;  %v879_v37 = vmax.f32 %v731_v29, 0.0 }
 0x129   :  { %v607_v34 = vpop.f32.mrf.mxu0  ;;  %v733_v35 = vpop.f32.mrf.mxu1 }
 0x12a   :  { %v608_v40 = vadd.f32 %v1466_v27, %v607_v34  ;;  %v734_v41 = vadd.f32 %v1466_v27, %v733_v35  ;;  %v907_v50 = vmax.f32 %v847_v42, %v849_v36  ;;  %v921_v51 = vmax.f32 %v877_v43, %v879_v37 }
 0x12b   :  { %v609_v38 = vpop.f32.mrf.mxu0  ;;  %v735_v39 = vpop.f32.mrf.mxu1 }
 0x12c   :  { %v850_v54 = vmax.f32 %v608_v40, 0.0  ;;  %v880_v55 = vmax.f32 %v734_v41, 0.0 }
 0x12d   :  { %v612_v46 = vpop.f32.mrf.mxu0  ;;  %v738_v47 = vpop.f32.mrf.mxu1 }
 0x12e   :  { %v613_v48 = vadd.f32 %v1466_v27, %v612_v46  ;;  %v739_v49 = vadd.f32 %v1466_v27, %v738_v47  ;;  %v908_v4 = vmax.f32 %v848_v58, %v850_v54  ;;  %v922_v5 = vmax.f32 %v878_v59, %v880_v55 }
 0x12f   :  { %v614_v52 = vpop.f32.mrf.mxu0  ;;  %v740_v53 = vpop.f32.mrf.mxu1 }
 0x130   :  { %v851_v56 = vmax.f32 %v613_v48, 0.0  ;;  %v881_v57 = vmax.f32 %v739_v49, 0.0 }
 0x131   :  { %v615_v60 = vpop.f32.mrf.mxu0  ;;  %v741_v61 = vpop.f32.mrf.mxu1 }
 0x132   :  { %v935_v62 = vmax.f32 %v907_v50, %v851_v56  ;;  %v949_v63 = vmax.f32 %v921_v51, %v881_v57  ;;  %v616_v0 = vadd.f32 %v1466_v27, %v615_v60  ;;  %v742_v1 = vadd.f32 %v1466_v27, %v741_v61 }
 0x133   :  { %v617_v2 = vpop.f32.mrf.mxu0  ;;  %v743_v3 = vpop.f32.mrf.mxu1 }
 0x134   :  { %963 = vst [vmem:[#allocation2] sm:$0xff] %v935_v62  ;;  %977 = vst [vmem:[#allocation2 + $0x70] sm:$0xff] %v949_v63  ;;  %v852_v6 = vmax.f32 %v616_v0, 0.0  ;;  %v882_v7 = vmax.f32 %v742_v1, 0.0 }
 0x135   :  { %v620_v8 = vpop.f32.mrf.mxu0  ;;  %v746_v9 = vpop.f32.mrf.mxu1 }
 0x136   :  { %v936_v10 = vmax.f32 %v908_v4, %v852_v6  ;;  %v950_v11 = vmax.f32 %v922_v5, %v882_v7  ;;  %v621_v14 = vadd.f32 %v1466_v27, %v620_v8  ;;  %v747_v15 = vadd.f32 %v1466_v27, %v746_v9 }
 0x137   :  { %v622_v12 = vpop.f32.mrf.mxu0  ;;  %v748_v13 = vpop.f32.mrf.mxu1 }
 0x138   :  { %964 = vst [vmem:[#allocation2 + $0x8] sm:$0xff] %v936_v10  ;;  %978 = vst [vmem:[#allocation2 + $0x78] sm:$0xff] %v950_v11  ;;  %v853_v22 = vmax.f32 %v621_v14, 0.0  ;;  %v883_v23 = vmax.f32 %v747_v15, 0.0 }
 0x139   :  { %v623_v16 = vpop.f32.mrf.mxu0  ;;  %v749_v17 = vpop.f32.mrf.mxu1 }
 0x13a   :  { %v624_v20 = vadd.f32 %v1466_v27, %v623_v16  ;;  %v750_v21 = vadd.f32 %v1466_v27, %v749_v17  ;;  %v909_v39 = vmax.f32 %v851_v56, %v853_v22  ;;  %v923_v40 = vmax.f32 %v881_v57, %v883_v23 }
 0x13b   :  { %v625_v18 = vpop.f32.mrf.mxu0  ;;  %v751_v19 = vpop.f32.mrf.mxu1 }
 0x13c   :  { %v854_v35 = vmax.f32 %v624_v20, 0.0  ;;  %v884_v36 = vmax.f32 %v750_v21, 0.0 }
 0x13d   :  { %v628_v24 = vpop.f32.mrf.mxu0  ;;  %v754_v25 = vpop.f32.mrf.mxu1 }
 0x13e   :  { %v1485_v26 = vadd.f32 %v1466_v27, %v628_v24  ;;  %v1488_v28 = vadd.f32 %v1466_v27, %v754_v25  ;;  %v910_v55 = vmax.f32 %v852_v6, %v854_v35  ;;  %v924_v56 = vmax.f32 %v882_v7, %v884_v36 }
 0x13f   :  { %v991_v29 = vld [vmem:[#allocation2] ss:$2 sm:$0x7f]  ;;  %v1019_v30 = vld [vmem:[#allocation2 + $0x1] ss:$2 sm:$0x7f]  ;;  %v630_v31 = vpop.f32.mrf.mxu0  ;;  %v756_v32 = vpop.f32.mrf.mxu1 }
 0x140   :  { %v1074_v33 = vmax.f32 %v991_v29, %v1019_v30  ;;  %v1005_v34 = vld [vmem:[#allocation2 + $0x70] ss:$2 sm:$0x7f]  ;;  %v1047_v37 = vld [vmem:[#allocation2 + $0x2] ss:$2 sm:$0x7f] }
 0x141   :  { %v1033_v38 = vld [vmem:[#allocation2 + $0x71] ss:$2 sm:$0x7f]  ;;  %v631_v41 = vpop.f32.mrf.mxu0  ;;  %v757_v42 = vpop.f32.mrf.mxu1  ;;  %v855_v45 = vmax.f32 %v1485_v26, 0.0  ;;  %v885_v46 = vmax.f32 %v1488_v28, 0.0 }
 0x142   :  { %v1088_v43 = vmax.f32 %v1074_v33, %v1047_v37  ;;  %v1081_v44 = vmax.f32 %v1005_v34, %v1033_v38  ;;  %v1061_v47 = vld [vmem:[#allocation2 + $0x72] ss:$2 sm:$0x7f]  ;;  %v632_v48 = vadd.f32 %v1466_v27, %v631_v41  ;;  %v758_v49 = vadd.f32 %v1466_v27, %v757_v42 }
 0x143   :  { %v633_v50 = vpop.f32.mrf.mxu0  ;;  %v759_v51 = vpop.f32.mrf.mxu1  ;;  %v937_v53 = vmax.f32 %v909_v39, %v855_v45  ;;  %v951_v54 = vmax.f32 %v923_v40, %v885_v46 }
 0x144   :  { %1102 = vst [vmem:[%s1615_s3] sm:$0x7f] %v1088_v43  ;;  %v1095_v52 = vmax.f32 %v1081_v44, %v1061_v47  ;;  %v856_v57 = vmax.f32 %v632_v48, 0.0  ;;  %v886_v58 = vmax.f32 %v758_v49, 0.0 }
 0x145   :  { %v636_v59 = vpop.f32.mrf.mxu0  ;;  %v762_v60 = vpop.f32.mrf.mxu1  ;;  %965 = vst [vmem:[#allocation2 + $0x10] sm:$0xff] %v937_v53  ;;  %979 = vst [vmem:[#allocation2 + $0x80] sm:$0xff] %v951_v54 }
 0x146   :  { %1109 = vst [vmem:[%s1615_s3 + $0x38] sm:$0x7f] %v1095_v52  ;;  %v938_v61 = vmax.f32 %v910_v55, %v856_v57  ;;  %v952_v62 = vmax.f32 %v924_v56, %v886_v58  ;;  %v637_v3 = vadd.f32 %v1466_v27, %v636_v59  ;;  %v763_v4 = vadd.f32 %v1466_v27, %v762_v60 }
 0x147   :  { %v638_v63 = vpop.f32.mrf.mxu0  ;;  %v764_v0 = vpop.f32.mrf.mxu1 }
 0x148   :  { %966 = vst [vmem:[#allocation2 + $0x18] sm:$0xff] %v938_v61  ;;  %980 = vst [vmem:[#allocation2 + $0x88] sm:$0xff] %v952_v62  ;;  %v857_v11 = vmax.f32 %v637_v3, 0.0  ;;  %v887_v12 = vmax.f32 %v763_v4, 0.0 }
 0x149   :  { %v639_v1 = vpop.f32.mrf.mxu0  ;;  %v765_v2 = vpop.f32.mrf.mxu1 }
 0x14a   :  { %v640_v5 = vadd.f32 %v1466_v27, %v639_v1  ;;  %v766_v6 = vadd.f32 %v1466_v27, %v765_v2  ;;  %v911_v28 = vmax.f32 %v855_v45, %v857_v11  ;;  %v925_v29 = vmax.f32 %v885_v46, %v887_v12 }
 0x14b   :  { %v641_v7 = vpop.f32.mrf.mxu0  ;;  %v767_v8 = vpop.f32.mrf.mxu1 }
 0x14c   :  { %v858_v13 = vmax.f32 %v640_v5, 0.0  ;;  %v888_v14 = vmax.f32 %v766_v6, 0.0 }
 0x14d   :  { %v644_v9 = vpop.f32.mrf.mxu0  ;;  %v770_v10 = vpop.f32.mrf.mxu1 }
 0x14e   :  { %v1505_v15 = vadd.f32 %v1466_v27, %v644_v9  ;;  %v1508_v16 = vadd.f32 %v1466_v27, %v770_v10  ;;  %v912_v39 = vmax.f32 %v856_v57, %v858_v13  ;;  %v926_v40 = vmax.f32 %v886_v58, %v888_v14 }
 0x14f   :  { %v646_v17 = vpop.f32.mrf.mxu0  ;;  %v772_v18 = vpop.f32.mrf.mxu1  ;;  %v993_v19 = vld [vmem:[#allocation2 + $0x10] ss:$2 sm:$0x7f]  ;;  %v1021_v20 = vld [vmem:[#allocation2 + $0x11] ss:$2 sm:$0x7f] }
 0x150   :  { %v1075_v21 = vmax.f32 %v993_v19, %v1021_v20  ;;  %v1007_v22 = vld [vmem:[#allocation2 + $0x80] ss:$2 sm:$0x7f]  ;;  %v1049_v25 = vld [vmem:[#allocation2 + $0x12] ss:$2 sm:$0x7f] }
 0x151   :  { %v647_v23 = vpop.f32.mrf.mxu0  ;;  %v773_v24 = vpop.f32.mrf.mxu1  ;;  %v1035_v26 = vld [vmem:[#allocation2 + $0x81] ss:$2 sm:$0x7f]  ;;  %v859_v34 = vmax.f32 %v1505_v15, 0.0  ;;  %v889_v35 = vmax.f32 %v1508_v16, 0.0 }
 0x152   :  { %v1511_v30 = vadd.f32 %v1466_v27, %v647_v23  ;;  %v1514_v31 = vadd.f32 %v1466_v27, %v773_v24  ;;  %v1089_v32 = vmax.f32 %v1075_v21, %v1049_v25  ;;  %v1082_v33 = vmax.f32 %v1007_v22, %v1035_v26  ;;  %v1063_v38 = vld [vmem:[#allocation2 + $0x82] ss:$2 sm:$0x7f] }
 0x153   :  { %v649_v36 = vpop.f32.mrf.mxu0  ;;  %v775_v37 = vpop.f32.mrf.mxu1  ;;  %v939_v44 = vmax.f32 %v911_v28, %v859_v34  ;;  %v953_v45 = vmax.f32 %v925_v29, %v889_v35 }
 0x154   :  { %v860_v41 = vmax.f32 %v1511_v30, 0.0  ;;  %v890_v42 = vmax.f32 %v1514_v31, 0.0  ;;  %1103 = vst [vmem:[%s1615_s3 + $0x8] sm:$0x7f] %v1089_v32  ;;  %v1096_v43 = vmax.f32 %v1082_v33, %v1063_v38 }
 0x155   :  { %v652_v46 = vpop.f32.mrf.mxu0  ;;  %v778_v47 = vpop.f32.mrf.mxu1  ;;  %967 = vst [vmem:[#allocation2 + $0x20] sm:$0xff] %v939_v44  ;;  %981 = vst [vmem:[#allocation2 + $0x90] sm:$0xff] %v953_v45 }
 0x156   :  { %v940_v48 = vmax.f32 %v912_v39, %v860_v41  ;;  %v954_v49 = vmax.f32 %v926_v40, %v890_v42  ;;  %1110 = vst [vmem:[%s1615_s3 + $0x40] sm:$0x7f] %v1096_v43  ;;  %v653_v52 = vadd.f32 %v1466_v27, %v652_v46  ;;  %v779_v53 = vadd.f32 %v1466_v27, %v778_v47 }
 0x157   :  { %v654_v50 = vpop.f32.mrf.mxu0  ;;  %v780_v51 = vpop.f32.mrf.mxu1 }
 0x158   :  { %968 = vst [vmem:[#allocation2 + $0x28] sm:$0xff] %v940_v48  ;;  %982 = vst [vmem:[#allocation2 + $0x98] sm:$0xff] %v954_v49  ;;  %v861_v60 = vmax.f32 %v653_v52, 0.0  ;;  %v891_v61 = vmax.f32 %v779_v53, 0.0 }
 0x159   :  { %v655_v54 = vpop.f32.mrf.mxu0  ;;  %v781_v55 = vpop.f32.mrf.mxu1 }
 0x15a   :  { %v656_v58 = vadd.f32 %v1466_v27, %v655_v54  ;;  %v782_v59 = vadd.f32 %v1466_v27, %v781_v55  ;;  %v913_v12 = vmax.f32 %v859_v34, %v861_v60  ;;  %v927_v13 = vmax.f32 %v889_v35, %v891_v61 }
 0x15b   :  { %v657_v56 = vpop.f32.mrf.mxu0  ;;  %v783_v57 = vpop.f32.mrf.mxu1 }
 0x15c   :  { %v862_v8 = vmax.f32 %v656_v58, 0.0  ;;  %v892_v9 = vmax.f32 %v782_v59, 0.0 }
 0x15d   :  { %v660_v62 = vpop.f32.mrf.mxu0  ;;  %v786_v63 = vpop.f32.mrf.mxu1 }
 0x15e   :  { %v1531_v0 = vadd.f32 %v1466_v27, %v660_v62  ;;  %v1534_v1 = vadd.f32 %v1466_v27, %v786_v63  ;;  %v914_v29 = vmax.f32 %v860_v41, %v862_v8  ;;  %v928_v30 = vmax.f32 %v890_v42, %v892_v9 }
 0x15f   :  { %v995_v2 = vld [vmem:[#allocation2 + $0x20] ss:$2 sm:$0x7f]  ;;  %v1023_v3 = vld [vmem:[#allocation2 + $0x21] ss:$2 sm:$0x7f]  ;;  %v662_v4 = vpop.f32.mrf.mxu0  ;;  %v788_v5 = vpop.f32.mrf.mxu1 }
 0x160   :  { %v1076_v6 = vmax.f32 %v995_v2, %v1023_v3  ;;  %v1009_v7 = vld [vmem:[#allocation2 + $0x90] ss:$2 sm:$0x7f]  ;;  %v1051_v10 = vld [vmem:[#allocation2 + $0x22] ss:$2 sm:$0x7f] }
 0x161   :  { %v1037_v11 = vld [vmem:[#allocation2 + $0x91] ss:$2 sm:$0x7f]  ;;  %v663_v14 = vpop.f32.mrf.mxu0  ;;  %v789_v15 = vpop.f32.mrf.mxu1  ;;  %v863_v18 = vmax.f32 %v1531_v0, 0.0  ;;  %v893_v19 = vmax.f32 %v1534_v1, 0.0 }
 0x162   :  { %v1090_v16 = vmax.f32 %v1076_v6, %v1051_v10  ;;  %v1083_v17 = vmax.f32 %v1009_v7, %v1037_v11  ;;  %v1065_v20 = vld [vmem:[#allocation2 + $0x92] ss:$2 sm:$0x7f]  ;;  %v664_v21 = vadd.f32 %v1466_v27, %v663_v14  ;;  %v790_v22 = vadd.f32 %v1466_v27, %v789_v15 }
 0x163   :  { %v665_v23 = vpop.f32.mrf.mxu0  ;;  %v791_v24 = vpop.f32.mrf.mxu1  ;;  %v941_v26 = vmax.f32 %v913_v12, %v863_v18  ;;  %v955_v28 = vmax.f32 %v927_v13, %v893_v19 }
 0x164   :  { %1104 = vst [vmem:[%s1615_s3 + $0x10] sm:$0x7f] %v1090_v16  ;;  %v1097_v25 = vmax.f32 %v1083_v17, %v1065_v20  ;;  %v864_v31 = vmax.f32 %v664_v21, 0.0  ;;  %v894_v32 = vmax.f32 %v790_v22, 0.0 }
 0x165   :  { %v668_v33 = vpop.f32.mrf.mxu0  ;;  %v794_v34 = vpop.f32.mrf.mxu1  ;;  %969 = vst [vmem:[#allocation2 + $0x30] sm:$0xff] %v941_v26  ;;  %983 = vst [vmem:[#allocation2 + $0xa0] sm:$0xff] %v955_v28 }
 0x166   :  { %1111 = vst [vmem:[%s1615_s3 + $0x48] sm:$0x7f] %v1097_v25  ;;  %v942_v35 = vmax.f32 %v914_v29, %v864_v31  ;;  %v956_v36 = vmax.f32 %v928_v30, %v894_v32  ;;  %v669_v41 = vadd.f32 %v1466_v27, %v668_v33  ;;  %v795_v42 = vadd.f32 %v1466_v27, %v794_v34 }
 0x167   :  { %v670_v37 = vpop.f32.mrf.mxu0  ;;  %v796_v38 = vpop.f32.mrf.mxu1 }
 0x168   :  { %970 = vst [vmem:[#allocation2 + $0x38] sm:$0xff] %v942_v35  ;;  %984 = vst [vmem:[#allocation2 + $0xa8] sm:$0xff] %v956_v36  ;;  %v865_v49 = vmax.f32 %v669_v41, 0.0  ;;  %v895_v50 = vmax.f32 %v795_v42, 0.0 }
 0x169   :  { %v671_v39 = vpop.f32.mrf.mxu0  ;;  %v797_v40 = vpop.f32.mrf.mxu1 }
 0x16a   :  { %v672_v43 = vadd.f32 %v1466_v27, %v671_v39  ;;  %v798_v44 = vadd.f32 %v1466_v27, %v797_v40  ;;  %v915_v1 = vmax.f32 %v863_v18, %v865_v49  ;;  %v929_v2 = vmax.f32 %v893_v19, %v895_v50 }
 0x16b   :  { %v673_v45 = vpop.f32.mrf.mxu0  ;;  %v799_v46 = vpop.f32.mrf.mxu1 }
 0x16c   :  { %v866_v51 = vmax.f32 %v672_v43, 0.0  ;;  %v896_v52 = vmax.f32 %v798_v44, 0.0 }
 0x16d   :  { %v676_v47 = vpop.f32.mrf.mxu0  ;;  %v802_v48 = vpop.f32.mrf.mxu1 }
 0x16e   :  { %v1551_v53 = vadd.f32 %v1466_v27, %v676_v47  ;;  %v1554_v54 = vadd.f32 %v1466_v27, %v802_v48  ;;  %v916_v12 = vmax.f32 %v864_v31, %v866_v51  ;;  %v930_v13 = vmax.f32 %v894_v32, %v896_v52 }
 0x16f   :  { %v678_v55 = vpop.f32.mrf.mxu0  ;;  %v804_v56 = vpop.f32.mrf.mxu1  ;;  %v997_v57 = vld [vmem:[#allocation2 + $0x30] ss:$2 sm:$0x7f]  ;;  %v1025_v58 = vld [vmem:[#allocation2 + $0x31] ss:$2 sm:$0x7f] }
 0x170   :  { %v1077_v59 = vmax.f32 %v997_v57, %v1025_v58  ;;  %v1011_v60 = vld [vmem:[#allocation2 + $0xa0] ss:$2 sm:$0x7f]  ;;  %v1053_v63 = vld [vmem:[#allocation2 + $0x32] ss:$2 sm:$0x7f] }
 0x171   :  { %v679_v61 = vpop.f32.mrf.mxu0  ;;  %v805_v62 = vpop.f32.mrf.mxu1  ;;  %v1039_v0 = vld [vmem:[#allocation2 + $0xa1] ss:$2 sm:$0x7f]  ;;  %v867_v7 = vmax.f32 %v1551_v53, 0.0  ;;  %v897_v8 = vmax.f32 %v1554_v54, 0.0 }
 0x172   :  { %v1557_v3 = vadd.f32 %v1466_v27, %v679_v61  ;;  %v1560_v4 = vadd.f32 %v1466_v27, %v805_v62  ;;  %v1091_v5 = vmax.f32 %v1077_v59, %v1053_v63  ;;  %v1084_v6 = vmax.f32 %v1011_v60, %v1039_v0  ;;  %v1067_v11 = vld [vmem:[#allocation2 + $0xa2] ss:$2 sm:$0x7f] }
 0x173   :  { %v681_v9 = vpop.f32.mrf.mxu0  ;;  %v807_v10 = vpop.f32.mrf.mxu1  ;;  %v943_v17 = vmax.f32 %v915_v1, %v867_v7  ;;  %v957_v18 = vmax.f32 %v929_v2, %v897_v8 }
 0x174   :  { %v868_v14 = vmax.f32 %v1557_v3, 0.0  ;;  %v898_v15 = vmax.f32 %v1560_v4, 0.0  ;;  %1105 = vst [vmem:[%s1615_s3 + $0x18] sm:$0x7f] %v1091_v5  ;;  %v1098_v16 = vmax.f32 %v1084_v6, %v1067_v11 }
 0x175   :  { %v684_v19 = vpop.f32.mrf.mxu0  ;;  %v810_v20 = vpop.f32.mrf.mxu1  ;;  %971 = vst [vmem:[#allocation2 + $0x40] sm:$0xff] %v943_v17  ;;  %985 = vst [vmem:[#allocation2 + $0xb0] sm:$0xff] %v957_v18 }
 0x176   :  { %v944_v21 = vmax.f32 %v916_v12, %v868_v14  ;;  %v958_v22 = vmax.f32 %v930_v13, %v898_v15  ;;  %1112 = vst [vmem:[%s1615_s3 + $0x50] sm:$0x7f] %v1098_v16  ;;  %v685_v25 = vadd.f32 %v1466_v27, %v684_v19  ;;  %v811_v26 = vadd.f32 %v1466_v27, %v810_v20 }
 0x177   :  { %v686_v23 = vpop.f32.mrf.mxu0  ;;  %v812_v24 = vpop.f32.mrf.mxu1 }
 0x178   :  { %972 = vst [vmem:[#allocation2 + $0x48] sm:$0xff] %v944_v21  ;;  %986 = vst [vmem:[#allocation2 + $0xb8] sm:$0xff] %v958_v22  ;;  %v869_v34 = vmax.f32 %v685_v25, 0.0  ;;  %v899_v35 = vmax.f32 %v811_v26, 0.0 }
 0x179   :  { %v687_v28 = vpop.f32.mrf.mxu0  ;;  %v813_v29 = vpop.f32.mrf.mxu1 }
 0x17a   :  { %v688_v32 = vadd.f32 %v1466_v27, %v687_v28  ;;  %v814_v33 = vadd.f32 %v1466_v27, %v813_v29  ;;  %v917_v50 = vmax.f32 %v867_v7, %v869_v34  ;;  %v931_v51 = vmax.f32 %v897_v8, %v899_v35 }
 0x17b   :  { %v689_v30 = vpop.f32.mrf.mxu0  ;;  %v815_v31 = vpop.f32.mrf.mxu1 }
 0x17c   :  { %v870_v46 = vmax.f32 %v688_v32, 0.0  ;;  %v900_v47 = vmax.f32 %v814_v33, 0.0 }
 0x17d   :  { %v692_v36 = vpop.f32.mrf.mxu0  ;;  %v818_v37 = vpop.f32.mrf.mxu1 }
 0x17e   :  { %v1577_v38 = vadd.f32 %v1466_v27, %v692_v36  ;;  %v1580_v39 = vadd.f32 %v1466_v27, %v818_v37  ;;  %v918_v2 = vmax.f32 %v868_v14, %v870_v46  ;;  %v932_v3 = vmax.f32 %v898_v15, %v900_v47 }
 0x17f   :  { %v999_v40 = vld [vmem:[#allocation2 + $0x40] ss:$2 sm:$0x7f]  ;;  %v1027_v41 = vld [vmem:[#allocation2 + $0x41] ss:$2 sm:$0x7f]  ;;  %v694_v42 = vpop.f32.mrf.mxu0  ;;  %v820_v43 = vpop.f32.mrf.mxu1 }
 0x180   :  { %v1078_v44 = vmax.f32 %v999_v40, %v1027_v41  ;;  %v1013_v45 = vld [vmem:[#allocation2 + $0xb0] ss:$2 sm:$0x7f]  ;;  %v1055_v48 = vld [vmem:[#allocation2 + $0x42] ss:$2 sm:$0x7f] }
 0x181   :  { %v1041_v49 = vld [vmem:[#allocation2 + $0xb1] ss:$2 sm:$0x7f]  ;;  %v695_v52 = vpop.f32.mrf.mxu0  ;;  %v821_v53 = vpop.f32.mrf.mxu1  ;;  %v871_v56 = vmax.f32 %v1577_v38, 0.0  ;;  %v901_v57 = vmax.f32 %v1580_v39, 0.0 }
 0x182   :  { %v1092_v54 = vmax.f32 %v1078_v44, %v1055_v48  ;;  %v1085_v55 = vmax.f32 %v1013_v45, %v1041_v49  ;;  %v1069_v58 = vld [vmem:[#allocation2 + $0xb2] ss:$2 sm:$0x7f]  ;;  %v696_v59 = vadd.f32 %v1466_v27, %v695_v52  ;;  %v822_v60 = vadd.f32 %v1466_v27, %v821_v53 }
 0x183   :  { %v697_v61 = vpop.f32.mrf.mxu0  ;;  %v823_v62 = vpop.f32.mrf.mxu1  ;;  %v945_v0 = vmax.f32 %v917_v50, %v871_v56  ;;  %v959_v1 = vmax.f32 %v931_v51, %v901_v57 }
 0x184   :  { %1106 = vst [vmem:[%s1615_s3 + $0x20] sm:$0x7f] %v1092_v54  ;;  %v1099_v63 = vmax.f32 %v1085_v55, %v1069_v58  ;;  %v872_v4 = vmax.f32 %v696_v59, 0.0  ;;  %v902_v5 = vmax.f32 %v822_v60, 0.0 }
 0x185   :  { %v700_v6 = vpop.f32.mrf.mxu0  ;;  %v826_v7 = vpop.f32.mrf.mxu1  ;;  %973 = vst [vmem:[#allocation2 + $0x50] sm:$0xff] %v945_v0  ;;  %987 = vst [vmem:[#allocation2 + $0xc0] sm:$0xff] %v959_v1 }
 0x186   :  { %1113 = vst [vmem:[%s1615_s3 + $0x58] sm:$0x7f] %v1099_v63  ;;  %v946_v8 = vmax.f32 %v918_v2, %v872_v4  ;;  %v960_v9 = vmax.f32 %v932_v3, %v902_v5  ;;  %v701_v14 = vadd.f32 %v1466_v27, %v700_v6  ;;  %v827_v15 = vadd.f32 %v1466_v27, %v826_v7 }
 0x187   :  { %v702_v10 = vpop.f32.mrf.mxu0  ;;  %v828_v11 = vpop.f32.mrf.mxu1 }
 0x188   :  { %974 = vst [vmem:[#allocation2 + $0x58] sm:$0xff] %v946_v8  ;;  %988 = vst [vmem:[#allocation2 + $0xc8] sm:$0xff] %v960_v9  ;;  %v873_v22 = vmax.f32 %v701_v14, 0.0  ;;  %v903_v23 = vmax.f32 %v827_v15, 0.0 }
 0x189   :  { %v703_v12 = vpop.f32.mrf.mxu0  ;;  %v829_v13 = vpop.f32.mrf.mxu1 }
 0x18a   :  { %v704_v16 = vadd.f32 %v1466_v27, %v703_v12  ;;  %v830_v17 = vadd.f32 %v1466_v27, %v829_v13  ;;  %v919_v39 = vmax.f32 %v871_v56, %v873_v22  ;;  %v933_v40 = vmax.f32 %v901_v57, %v903_v23 }
 0x18b   :  { %v705_v18 = vpop.f32.mrf.mxu0  ;;  %v831_v19 = vpop.f32.mrf.mxu1 }
 0x18c   :  { %v874_v24 = vmax.f32 %v704_v16, 0.0  ;;  %v904_v25 = vmax.f32 %v830_v17, 0.0 }
 0x18d   :  { %v708_v20 = vpop.f32.mrf.mxu0  ;;  %v834_v21 = vpop.f32.mrf.mxu1 }
 0x18e   :  { %v709_v26 = vadd.f32 %v1466_v27, %v708_v20  ;;  %v835_v28 = vadd.f32 %v1466_v27, %v834_v21  ;;  %v920_v50 = vmax.f32 %v872_v4, %v874_v24  ;;  %v934_v51 = vmax.f32 %v902_v5, %v904_v25 }
 0x18f   :  { %v710_v29 = vpop.f32.mrf.mxu0  ;;  %v836_v30 = vpop.f32.mrf.mxu1  ;;  %v1001_v31 = vld [vmem:[#allocation2 + $0x50] ss:$2 sm:$0x7f]  ;;  %v1029_v32 = vld [vmem:[#allocation2 + $0x51] ss:$2 sm:$0x7f] }
 0x190   :  { %v1079_v33 = vmax.f32 %v1001_v31, %v1029_v32  ;;  %v1015_v34 = vld [vmem:[#allocation2 + $0xc0] ss:$2 sm:$0x7f]  ;;  %v1057_v37 = vld [vmem:[#allocation2 + $0x52] ss:$2 sm:$0x7f] }
 0x191   :  { %v711_v35 = vpop.f32.mrf.mxu0  ;;  %v837_v36 = vpop.f32.mrf.mxu1  ;;  %v1043_v38 = vld [vmem:[#allocation2 + $0xc1] ss:$2 sm:$0x7f]  ;;  %v875_v45 = vmax.f32 %v709_v26, 0.0  ;;  %v905_v46 = vmax.f32 %v835_v28, 0.0 }
 0x192   :  { %v712_v41 = vadd.f32 %v1466_v27, %v711_v35  ;;  %v838_v42 = vadd.f32 %v1466_v27, %v837_v36  ;;  %v1093_v43 = vmax.f32 %v1079_v33, %v1057_v37  ;;  %v1086_v44 = vmax.f32 %v1015_v34, %v1043_v38  ;;  %v1071_v49 = vld [vmem:[#allocation2 + $0xc2] ss:$2 sm:$0x7f] }
 0x193   :  { %v713_v47 = vpop.f32.mrf.mxu0  ;;  %v839_v48 = vpop.f32.mrf.mxu1  ;;  %v947_v55 = vmax.f32 %v919_v39, %v875_v45  ;;  %v961_v56 = vmax.f32 %v933_v40, %v905_v46 }
 0x194   :  { %v876_v52 = vmax.f32 %v712_v41, 0.0  ;;  %v906_v53 = vmax.f32 %v838_v42, 0.0  ;;  %1107 = vst [vmem:[%s1615_s3 + $0x28] sm:$0x7f] %v1093_v43  ;;  %v1100_v54 = vmax.f32 %v1086_v44, %v1071_v49 }
 0x195   :  { %v716_v57 = vpop.f32.mrf.mxu0  ;;  %v842_v27 = vpop.f32.mrf.mxu1  ;;  %975 = vst [vmem:[#allocation2 + $0x60] sm:$0xff] %v947_v55  ;;  %989 = vst [vmem:[#allocation2 + $0xd0] sm:$0xff] %v961_v56 }
 0x196   :  { %v948_v58 = vmax.f32 %v920_v50, %v876_v52  ;;  %v962_v59 = vmax.f32 %v934_v51, %v906_v53  ;;  %1114 = vst [vmem:[%s1615_s3 + $0x60] sm:$0x7f] %v1100_v54 }
 0x197   :  { %v717_v60 = vpop.f32.mrf.mxu0  ;;  %v843_v61 = vpop.f32.mrf.mxu1 }
 0x198   :  { %976 = vst [vmem:[#allocation2 + $0x68] sm:$0xff] %v948_v58  ;;  %990 = vst [vmem:[#allocation2 + $0xd8] sm:$0xff] %v962_v59 }
 0x199   :  { %v718_v62 = vpop.f32.mrf.mxu0  ;;  %v844_v63 = vpop.f32.mrf.mxu1 }
 0x19b   :  { %v719_v0 = vpop.f32.mrf.mxu0  ;;  %v845_v1 = vpop.f32.mrf.mxu1 }
 0x19f   :  { %v1003_v2 = vld [vmem:[#allocation2 + $0x60] ss:$2 sm:$0x7f]  ;;  %v1031_v3 = vld [vmem:[#allocation2 + $0x61] ss:$2 sm:$0x7f] }
 0x1a0   :  { %v1080_v4 = vmax.f32 %v1003_v2, %v1031_v3  ;;  %v1017_v5 = vld [vmem:[#allocation2 + $0xd0] ss:$2 sm:$0x7f]  ;;  %v1059_v6 = vld [vmem:[#allocation2 + $0x62] ss:$2 sm:$0x7f] }
 0x1a1   :  { %v1045_v7 = vld [vmem:[#allocation2 + $0xd1] ss:$2 sm:$0x7f]  ;;  %v1073_v10 = vld [vmem:[#allocation2 + $0xd2] ss:$2 sm:$0x7f] }
 0x1a2   :  { %v1094_v8 = vmax.f32 %v1080_v4, %v1059_v6  ;;  %v1087_v9 = vmax.f32 %v1017_v5, %v1045_v7 }
 0x1a4   :  { %1108 = vst [vmem:[%s1615_s3 + $0x30] sm:$0x7f] %v1094_v8  ;;  %v1101_v11 = vmax.f32 %v1087_v9, %v1073_v10 }
 0x1a6   :  { %1115 = vst [vmem:[%s1615_s3 + $0x68] sm:$0x7f] %v1101_v11 }
 0x1a7   :  { %1120 = vsyncpa [#allocation4], 1 }
 0x1a8   :  { %1121 = vsyncpa [#allocation6], 1 }

</bundles_post_ra>
